<compile_context>
chip_gen: v6e
topology: v6e:2x2x1
jax: 0.10.0
libtpu: 0.0.40
codegen_flags: <defaults>
</compile_context>

<pallas_src>
import functools

import jax
import jax.numpy as jnp
from jax.experimental import pallas as pl
from jax.experimental.pallas import tpu as pltpu

LANES = 128
SUBLANES = 8
GROUP_ELEMS = SUBLANES * LANES                 # 1024 elements per (8,128) group
GROUPS_PER_TILE = 128                          # (128, 8, 128) f32 block = 512 KiB
TILE_ELEMS = GROUPS_PER_TILE * GROUP_ELEMS     # 131072 elements per grid step
NUM_CORE_SPLITS = 2                            # megacore split on v7x; neutral on 1-TC chips


def _rrmse_partial_kernel(o_ref, l_ref, acc_ref, *,
                          inner_tiles, n_full_tiles, n_groups):
    """Accumulates per-split partial sums of |o - l| / l into acc_ref (8,128)."""
    c = pl.program_id(0)            # core-split index ("parallel")
    i = pl.program_id(1)            # sequential tile index ("arbitrary")
    g = c * inner_tiles + i         # global tile index (overrun tiles masked below)

    @pl.when(i == 0)
    def _():
        acc_ref[...] = jnp.zeros_like(acc_ref)

    # Upcast in-register (free under the DMA); HBM traffic stays at native dtype.
    o = o_ref[...].astype(jnp.float32)
    l = l_ref[...].astype(jnp.float32)

    is_full = g < n_full_tiles

    # Hot path: full tile, no masking work at all.
    @pl.when(is_full)
    def _():
        err = jnp.abs(o - l) * pl.reciprocal(l, approx=False)
        acc_ref[...] += jnp.sum(err, axis=0)

    # Remainder path: runs for at most one tile per split (plus fully-masked
    # overrun tiles of the second split).  Masking is at group granularity
    # because host padding already zeroes the within-group remainder.
    @pl.when(jnp.logical_not(is_full))
    def _():
        shape = (GROUPS_PER_TILE, SUBLANES, LANES)
        grp = jax.lax.broadcasted_iota(jnp.int32, shape, 0)
        mask = (g * GROUPS_PER_TILE + grp) < n_groups
        one = jnp.float32(1.0)
        o_m = jnp.where(mask, o, one)
        l_m = jnp.where(mask, l, one)   # masked / OOB groups contribute exactly 0
        err = jnp.abs(o_m - l_m) * pl.reciprocal(l_m, approx=False)
        acc_ref[...] += jnp.sum(err, axis=0)


def loss_train(outputs, label):
    """Pallas equivalent of Loss_train.forward(outputs, label) -> scalar f32."""
    assert outputs.shape == label.shape, "outputs/label must match shapes"
    n = int(outputs.size)
    assert n > 0

    o = outputs.reshape(-1)
    l = label.reshape(-1)

    pad = (-n) % GROUP_ELEMS
    if pad:
        # TODO(synk): only taken when numel % 1024 != 0; costs one extra HBM pass.
        o = jnp.pad(o, (0, pad), constant_values=1)
        l = jnp.pad(l, (0, pad), constant_values=1)

    n_groups = (n + pad) // GROUP_ELEMS
    o3 = o.reshape(n_groups, SUBLANES, LANES)
    l3 = l.reshape(n_groups, SUBLANES, LANES)

    n_tiles = (n_groups + GROUPS_PER_TILE - 1) // GROUPS_PER_TILE
    num_splits = min(NUM_CORE_SPLITS, n_tiles)
    inner = (n_tiles + num_splits - 1) // num_splits
    n_full_tiles = n // TILE_ELEMS

    def in_map(c, i):
        # Clamp so the (rare) overrun tile of the second core split re-reads a
        # valid block; its contribution is masked to zero inside the kernel.
        return (jnp.minimum(c * inner + i, n_tiles - 1), 0, 0)

    kernel = functools.partial(
        _rrmse_partial_kernel,
        inner_tiles=inner,
        n_full_tiles=n_full_tiles,
        n_groups=n_groups,
    )

    partials = pl.pallas_call(
        kernel,
        out_shape=jax.ShapeDtypeStruct(
            (num_splits, SUBLANES, LANES), jnp.float32
        ),
        grid=(num_splits, inner),
        in_specs=[
            pl.BlockSpec((GROUPS_PER_TILE, SUBLANES, LANES), in_map),
            pl.BlockSpec((GROUPS_PER_TILE, SUBLANES, LANES), in_map),
        ],
        out_specs=pl.BlockSpec(
            (None, SUBLANES, LANES), lambda c, i: (c, 0, 0)
        ),
        compiler_params=pltpu.CompilerParams(
            dimension_semantics=("parallel", "arbitrary"),
        ),
    )(o3, l3)

    # Tiny final reduce (<= 2*8*128 elements) + mean normalization in XLA.
    return jnp.sum(partials) / n


if __name__ == "__main__":
    key = jax.random.PRNGKey(0)
    k1, k2, k3, k4 = jax.random.split(key, 4)

    # Small NCHW shapes consistent with the module's usage.
    B, C, H, W = 2, 4, 16, 16
    # label must be nonzero (it is the divisor); keep it in a positive range.
    label = jax.random.uniform(k1, (B, C, H, W), jnp.float32, 0.5, 1.5)
    outputs = label + 0.1 * jax.random.normal(k2, (B, C, H, W), jnp.float32)

    rrmse = jax.block_until_ready(loss_train(outputs, label))
    ref = jnp.mean(jnp.abs(outputs - label) / label)
    assert jnp.allclose(rrmse, ref, rtol=1e-4, atol=1e-6), (rrmse, ref)

    # Second case exercising the full-tile fast path, the masked remainder
    # path, and the 2-way core split (still < 1 MiB per tensor).
    label2 = jax.random.uniform(k3, (4, 4, 96, 96), jnp.float32, 0.5, 1.5)
    outputs2 = label2 + 0.1 * jax.random.normal(k4, (4, 4, 96, 96), jnp.float32)
    rrmse2 = jax.block_until_ready(loss_train(outputs2, label2))
    ref2 = jnp.mean(jnp.abs(outputs2 - label2) / label2)
    assert jnp.allclose(rrmse2, ref2, rtol=1e-4, atol=1e-6), (rrmse2, ref2)

    print("KERNEL_OK")
</pallas_src>

<mosaic_0001>
module attributes {stable_mosaic.version = 11 : i64} {
  func.func @_rrmse_partial_kernel(%arg0: i32, %arg1: i32, %arg2: memref<128x8x128xf32, #tpu.memory_space<vmem>>, %arg3: memref<128x8x128xf32, #tpu.memory_space<vmem>>, %arg4: memref<1x8x128xf32, #tpu.memory_space<vmem>>) attributes {dimension_semantics = [#tpu.dimension_semantics<parallel>, #tpu.dimension_semantics<arbitrary>], iteration_bounds = array<i64: 1, 1>, scalar_prefetch = 0 : i64, scratch_operands = 0 : i64, tpu.core_type = #tpu.core_type<tc>, window_params = [{transform_indices = @transform_0, window_bounds = array<i64: 128, 8, 128>}, {transform_indices = @transform_1, window_bounds = array<i64: 128, 8, 128>}, {transform_indices = @transform_2, window_bounds = array<i64: 1, 8, 128>}]} {
    %c1_i32 = arith.constant 1 : i32
    %0 = arith.muli %arg0, %c1_i32 : i32
    %1 = arith.addi %0, %arg1 : i32
    %c0_i32 = arith.constant 0 : i32
    %2 = arith.cmpi eq, %arg1, %c0_i32 : i32
    %3 = arith.extui %2 : i1 to i32
    %c0_i32_0 = arith.constant 0 : i32
    %4 = arith.cmpi ne, %3, %c0_i32_0 : i32
    scf.if %4 {
      %cst = arith.constant 0.000000e+00 : f32
      %13 = vector.broadcast %cst : f32 to vector<8x128xf32>
      %c0_9 = arith.constant 0 : index
      %c0_10 = arith.constant 0 : index
      %c0_11 = arith.constant 0 : index
      %14 = vector.load %arg4[%c0_9, %c0_10, %c0_11] : memref<1x8x128xf32, #tpu.memory_space<vmem>>, vector<1x8x128xf32>
      %15 = vector.shape_cast %14 : vector<1x8x128xf32> to vector<8x128xf32>
      %16 = vector.shape_cast %13 : vector<8x128xf32> to vector<1x8x128xf32>
      tpu.vector_store %arg4[%c0_9, %c0_10, %c0_11], %16 {strides = array<i32>} : memref<1x8x128xf32, #tpu.memory_space<vmem>>, vector<1x8x128xf32>,
    } else {
    }
    %c0 = arith.constant 0 : index
    %c0_1 = arith.constant 0 : index
    %c0_2 = arith.constant 0 : index
    %5 = vector.load %arg2[%c0, %c0_1, %c0_2] : memref<128x8x128xf32, #tpu.memory_space<vmem>>, vector<128x8x128xf32>
    %c0_3 = arith.constant 0 : index
    %c0_4 = arith.constant 0 : index
    %c0_5 = arith.constant 0 : index
    %6 = vector.load %arg3[%c0_3, %c0_4, %c0_5] : memref<128x8x128xf32, #tpu.memory_space<vmem>>, vector<128x8x128xf32>
    %c0_i32_6 = arith.constant 0 : i32
    %7 = arith.cmpi slt, %1, %c0_i32_6 : i32
    %8 = arith.extui %7 : i1 to i32
    %c0_i32_7 = arith.constant 0 : i32
    %9 = arith.cmpi ne, %8, %c0_i32_7 : i32
    scf.if %9 {
      %13 = arith.subf %5, %6 : vector<128x8x128xf32>
      %14 = math.absf %13 : vector<128x8x128xf32>
      %15 = tpu.reciprocal %6 : vector<128x8x128xf32> -> vector<128x8x128xf32>
      %16 = arith.mulf %14, %15 : vector<128x8x128xf32>
      %c0_9 = arith.constant 0 : index
      %c0_10 = arith.constant 0 : index
      %c0_11 = arith.constant 0 : index
      %17 = vector.load %arg4[%c0_9, %c0_10, %c0_11] : memref<1x8x128xf32, #tpu.memory_space<vmem>>, vector<1x8x128xf32>
      %18 = vector.shape_cast %17 : vector<1x8x128xf32> to vector<8x128xf32>
      %cst = arith.constant dense<0.000000e+00> : vector<8x128xf32>
      %19 = vector.multi_reduction <add>, %16, %cst [0] : vector<128x8x128xf32> to vector<8x128xf32>
      %20 = arith.addf %18, %19 : vector<8x128xf32>
      %c0_12 = arith.constant 0 : index
      %c0_13 = arith.constant 0 : index
      %c0_14 = arith.constant 0 : index
      %21 = vector.load %arg4[%c0_12, %c0_13, %c0_14] : memref<1x8x128xf32, #tpu.memory_space<vmem>>, vector<1x8x128xf32>
      %22 = vector.shape_cast %21 : vector<1x8x128xf32> to vector<8x128xf32>
      %23 = vector.shape_cast %20 : vector<8x128xf32> to vector<1x8x128xf32>
      tpu.vector_store %arg4[%c0_12, %c0_13, %c0_14], %23 {strides = array<i32>} : memref<1x8x128xf32, #tpu.memory_space<vmem>>, vector<1x8x128xf32>,
    } else {
    }
    %true = arith.constant true
    %10 = arith.xori %7, %true : i1
    %11 = arith.extui %10 : i1 to i32
    %c0_i32_8 = arith.constant 0 : i32
    %12 = arith.cmpi ne, %11, %c0_i32_8 : i32
    scf.if %12 {
      %13 = tpu.iota {dimensions = array<i32: 0>} : vector<128x8x128xi32>
      %c128_i32 = arith.constant 128 : i32
      %14 = arith.muli %1, %c128_i32 : i32
      %15 = vector.broadcast %14 : i32 to vector<128x8x128xi32>
      %16 = arith.addi %15, %13 : vector<128x8x128xi32>
      %c2_i32 = arith.constant 2 : i32
      %17 = vector.broadcast %c2_i32 : i32 to vector<128x8x128xi32>
      %18 = arith.cmpi slt, %16, %17 : vector<128x8x128xi32>
      %cst = arith.constant 1.000000e+00 : f32
      %19 = vector.broadcast %cst : f32 to vector<128x8x128xf32>
      %20 = arith.select %18, %5, %19 : vector<128x8x128xi1>, vector<128x8x128xf32>
      %cst_9 = arith.constant 1.000000e+00 : f32
      %21 = vector.broadcast %cst_9 : f32 to vector<128x8x128xf32>
      %22 = arith.select %18, %6, %21 : vector<128x8x128xi1>, vector<128x8x128xf32>
      %23 = arith.subf %20, %22 : vector<128x8x128xf32>
      %24 = math.absf %23 : vector<128x8x128xf32>
      %25 = tpu.reciprocal %22 : vector<128x8x128xf32> -> vector<128x8x128xf32>
      %26 = arith.mulf %24, %25 : vector<128x8x128xf32>
      %c0_10 = arith.constant 0 : index
      %c0_11 = arith.constant 0 : index
      %c0_12 = arith.constant 0 : index
      %27 = vector.load %arg4[%c0_10, %c0_11, %c0_12] : memref<1x8x128xf32, #tpu.memory_space<vmem>>, vector<1x8x128xf32>
      %28 = vector.shape_cast %27 : vector<1x8x128xf32> to vector<8x128xf32>
      %cst_13 = arith.constant dense<0.000000e+00> : vector<8x128xf32>
      %29 = vector.multi_reduction <add>, %26, %cst_13 [0] : vector<128x8x128xf32> to vector<8x128xf32>
      %30 = arith.addf %28, %29 : vector<8x128xf32>
      %c0_14 = arith.constant 0 : index
      %c0_15 = arith.constant 0 : index
      %c0_16 = arith.constant 0 : index
      %31 = vector.load %arg4[%c0_14, %c0_15, %c0_16] : memref<1x8x128xf32, #tpu.memory_space<vmem>>, vector<1x8x128xf32>
      %32 = vector.shape_cast %31 : vector<1x8x128xf32> to vector<8x128xf32>
      %33 = vector.shape_cast %30 : vector<8x128xf32> to vector<1x8x128xf32>
      tpu.vector_store %arg4[%c0_14, %c0_15, %c0_16], %33 {strides = array<i32>} : memref<1x8x128xf32, #tpu.memory_space<vmem>>, vector<1x8x128xf32>,
    } else {
    }
    return
  }
  func.func @transform_0(%arg0: i32, %arg1: i32) -> (i32, i32, i32) {
    %c1_i32 = arith.constant 1 : i32
    %0 = arith.muli %arg0, %c1_i32 : i32
    %1 = arith.addi %0, %arg1 : i32
    %c0_i32 = arith.constant 0 : i32
    %2 = arith.minsi %1, %c0_i32 : i32
    %c0_i32_0 = arith.constant 0 : i32
    %c0_i32_1 = arith.constant 0 : i32
    %c0_i32_2 = arith.constant 0 : i32
    return %2, %c0_i32_0, %c0_i32_1 : i32, i32, i32
  }
  func.func @transform_1(%arg0: i32, %arg1: i32) -> (i32, i32, i32) {
    %c1_i32 = arith.constant 1 : i32
    %0 = arith.muli %arg0, %c1_i32 : i32
    %1 = arith.addi %0, %arg1 : i32
    %c0_i32 = arith.constant 0 : i32
    %2 = arith.minsi %1, %c0_i32 : i32
    %c0_i32_0 = arith.constant 0 : i32
    %c0_i32_1 = arith.constant 0 : i32
    %c0_i32_2 = arith.constant 0 : i32
    return %2, %c0_i32_0, %c0_i32_1 : i32, i32, i32
  }
  func.func @transform_2(%arg0: i32, %arg1: i32) -> (i32, i32, i32) {
    %c0_i32 = arith.constant 0 : i32
    %c0_i32_0 = arith.constant 0 : i32
    %c0_i32_1 = arith.constant 0 : i32
    return %arg0, %c0_i32, %c0_i32_0 : i32, i32, i32
  }
}

</mosaic_0001>

<bundles_post_ra>
// kernel: tpu_custom_call.1
= control target key start
LH: loop header
LB: loop body
LE: loop exit
PB: predicated region body
PF: predicated region fallthrough
CT: control target
= control target key end

     0   :  { %7 = vsyncpa [#allocation3], 0  ;;  %s2264_s0 = inlined_call_operand.hbm [shape: f32[2,8,128], index: 0, kind: input, shape index: {}]   ;;  %s2265_s1 = inlined_call_operand.hbm [shape: f32[2,8,128], index: 1, kind: input, shape index: {}]   ;;  %s2266_s2 = inlined_call_operand.hbm [shape: f32[1,8,128], index: 2, kind: output, shape index: {}]  }
   0x1   :  { %8 = vsyncpa [#allocation6], 0 }
   0x2   :  { %9 = vsyncpa [#allocation4], 0 }
   0x3   :  { %20 = vsyncadd [#allocation3], 16128  ;;  %s2235_s9 = smov [#allocation2]  }
   0x4   :  { %s25_s10 = sshll.u32 %s2235_s9, 4  ;;  %s26_s10 = int_to_ptr.vmem [resolvable:$true] %s25_s10 }
   0x5   :  { %s2177_s11 = scalar_lea.vmem %s26_s10, 256  ;;  %s2181_s12 = scalar_lea.vmem %s26_s10, 16384 }
   0x6   :  { %p2178_p0 = scmp.ne.s32.totalorder %s26_s10, %s2177_s11  ;;  %p2182_p1 = scmp.lt.s32.totalorder %s26_s10, %s26_s10 }
   0x7   :  { %p2183_p2 = scmp.lt.s32.totalorder %s2181_s12, %s2177_s11 }
   0x9   :  { %p2184_p3 = por %p2183_p2, %p2182_p1 }
   0xb   :  { %p2185_p4 = pnand %p2184_p3, %p2178_p0 }
   0xd   :  { %2188 = shalt.err (!%p2185_p4)
}
   0xe   :  { %s2236_s13 = smov 128   ;;  %s2237_s14 = smov 8  }
   0xf   :  { %31 = dma.hbm_to_vmem [thread:$0]  %s2264_s0, 256, %s26_s10, [#allocation3], %s2236_s13, %s2236_s13, %s2237_s14  }
  0x10   :  { %42 = vsyncadd [#allocation6], 16128  ;;  %s2238_s17 = smov [#allocation5]  }
  0x11   :  { %s47_s18 = sshll.u32 %s2238_s17, 4  ;;  %s48_s18 = int_to_ptr.vmem [resolvable:$true] %s47_s18 }
  0x12   :  { %s2197_s19 = scalar_lea.vmem %s48_s18, 256  ;;  %s2201_s20 = scalar_lea.vmem %s48_s18, 16384 }
  0x13   :  { %p2198_p5 = scmp.ne.s32.totalorder %s48_s18, %s2197_s19  ;;  %p2202_p6 = scmp.lt.s32.totalorder %s48_s18, %s48_s18 }
  0x14   :  { %p2203_p7 = scmp.lt.s32.totalorder %s2201_s20, %s2197_s19 }
  0x16   :  { %p2204_p8 = por %p2203_p7, %p2202_p6 }
  0x18   :  { %p2205_p9 = pnand %p2204_p8, %p2198_p5 }
  0x1a   :  { %2208 = shalt.err (!%p2205_p9)
}
  0x1b   :  { %53 = dma.hbm_to_vmem [thread:$0]  %s2265_s1, 256, %s48_s18, [#allocation6], %s2236_s13, %s2236_s13, %s2237_s14  }
  0x1c   :  { %2229 = dma.done.wait [#allocation3], 16384  }
  0x1d   :  { %2230 = vsyncadd [#allocation3], 4294950912 }
  0x1e   :  { %2231 = dma.done.wait [#allocation6], 16384  }
  0x1f   :  { %2232 = vsyncadd [#allocation6], 4294950912  ;;  %v206_v0 = vld [vmem:[#allocation5] sm:$0xff]  ;;  %v207_v1 = vld [vmem:[#allocation5 + $0x8] sm:$0xff]  ;;  %s2239_s0 = smov [#allocation7]  }
  0x20   :  { %2165 = vrcp.f32 %v206_v0  ;;  %v78_v2 = vld [vmem:[#allocation2] sm:$0xff]  ;;  %v79_v3 = vld [vmem:[#allocation2 + $0x8] sm:$0xff]  ;;  %s2145_s1 = sshll.u32 %s2239_s0, 4  ;;  %s2146_s1 = int_to_ptr.vmem [resolvable:$true] %s2145_s1 }
  0x21   :  { %2167 = vrcp.f32 %v207_v1  ;;  %v1497_v4 = vsub.f32 %v78_v2, %v206_v0  ;;  %v1498_v5 = vsub.f32 %v79_v3, %v207_v1  ;;  %s2209_s23 = scalar_lea.vmem %s2146_s1, 128  ;;  %p2214_p11 = scmp.lt.s32.totalorder %s2146_s1, %s2146_s1 }
  0x22   :  { %p2210_p10 = scmp.ne.s32.totalorder %s2146_s1, %s2209_s23  ;;  %p2215_p12 = scmp.lt.s32.totalorder %s2209_s23, %s2209_s23 }
  0x23   :  { %v1625_v6 = vand.u32 2147483647, %v1497_v4  ;;  %v1626_v7 = vand.u32 2147483647, %v1498_v5 }
  0x24   :  { %p2216_p13 = por %p2215_p12, %p2214_p11 }
  0x26   :  { %p2217_p0 = pnand %p2216_p13, %p2210_p10 }
  0x2d   :  { %v2166_v8 = vpop.eup %2165 }
  0x2e   :  { %v2168_v9 = vpop.eup %2167  ;;  %v1881_v10 = vmul.f32 %v2166_v8, %v1625_v6 }
  0x2f   :  { %v1882_v11 = vmul.f32 %v2168_v9, %v1626_v7 }
  0x31   :  { %v2010_v12 = vadd.f32 %v1882_v11, %v1881_v10 }
  0x33   :  { %2138 = vst [vmem:[#allocation7] sm:$0xff] %v2010_v12 }
  0x34   :  { %2220 = shalt.err (!%p2217_p0)
}
  0x35   :  { %2148 = dma.vmem_to_hbm [thread:$0]  %s2146_s1, 128, %s2266_s2, [#allocation4]  }
  0x36   :  { %2233 = dma.done.wait [#allocation4], 128  }
  0x37   :  { %2234 = vsyncadd [#allocation4], 4294967168 }
  0x38   :  { %2152 = vsyncpa [#allocation3], 1 }
  0x39   :  { %2153 = vsyncpa [#allocation6], 1 }
  0x3a   :  { %2154 = vsyncpa [#allocation4], 1 }

</bundles_post_ra>
